<compile_context>
chip_gen: v7x
topology: tpu7x:2x2x1
jax: 0.10.0
libtpu: 0.0.40
codegen_flags: <defaults>
</compile_context>

<pallas_src>
import functools

import jax
import jax.numpy as jnp
from jax import lax
from jax.experimental import pallas as pl
from jax.experimental.pallas import tpu as pltpu


def _mha_kernel(num_heads, head_dim, scale,
                x_ref, y_ref,
                wq_ref, bq_ref,
                wk_ref, bk_ref,
                wv_ref, bv_ref,
                wp_ref, bp_ref,
                out_ref, attn_ref):
    x = x_ref[0]                          # (tn, c)
    y = y_ref[0]                          # (m, d)
    tn = x.shape[0]
    c = num_heads * head_dim
    dt = x.dtype                          # MXU operand dtype (bf16 in -> bf16 MXU)

    # Projections (MXU), f32 accumulation; fold the 1/sqrt(hd) scale into q.
    q = (jnp.dot(x, wq_ref[...], preferred_element_type=jnp.float32)
         + bq_ref[0]) * scale                                               # (tn, c)
    k = jnp.dot(y, wk_ref[...], preferred_element_type=jnp.float32) + bk_ref[0]   # (m, c)
    v = jnp.dot(y, wv_ref[...], preferred_element_type=jnp.float32) + bv_ref[0]   # (m, c)

    q = q.astype(dt)
    k = k.astype(dt)
    v = v.astype(dt)

    # Contract over the head_dim axis of both operands -> no explicit k.T.
    qk_dims = (((1,), (1,)), ((), ()))

    acc = jnp.zeros((tn, c), jnp.float32)
    for h in range(num_heads):
        lo = h * head_dim
        hi = lo + head_dim
        qh = q[:, lo:hi]                  # (tn, hd)
        kh = k[:, lo:hi]                  # (m, hd)
        vh = v[:, lo:hi]                  # (m, hd)

        s = lax.dot_general(qh, kh, qk_dims,
                            preferred_element_type=jnp.float32)             # (tn, m)
        # softmax over m (dim=2 of bnmh), f32 math.
        s = s - jnp.max(s, axis=-1, keepdims=True)
        e = jnp.exp(s)
        p = e * pl.reciprocal(jnp.sum(e, axis=-1, keepdims=True), approx=True)

        # Lane-dense per-head store: last dim is m.
        attn_ref[0, h, :, :] = p.astype(attn_ref.dtype)

        pv = jnp.dot(p.astype(dt), vh, preferred_element_type=jnp.float32)  # (tn, hd)
        # Fused output projection: out = sum_h (p_h @ v_h) @ Wp_T[h*hd:(h+1)*hd, :]
        acc = acc + jnp.dot(pv.astype(dt),
                            wp_ref[pl.ds(lo, head_dim), :],
                            preferred_element_type=jnp.float32)             # (tn, c)

    out_ref[0] = (acc + bp_ref[0]).astype(out_ref.dtype)


def _pick_q_tile(n):
    """Largest query tile that respects the (8, 128) block constraint."""
    if n <= 512:
        return n            # full-extent block is always legal
    for t in (512, 256, 128):
        if n % t == 0:
            return t
    return n                # fall back to full extent


def multi_head_attention(x, y, params, num_heads):
    if y is None:
        y = x
    b, n, c = x.shape
    _, m, d = y.shape
    head_dim = c // num_heads
    scale = head_dim ** (-0.5)
    dt = x.dtype

    # Wrapper-side layout plumbing (outside the kernel): transpose weights so
    # the kernel computes act @ W_T + b, split kv weights into k / v halves
    # (matches the (b, m, 2, h, hd) reshape semantics: first c rows -> keys),
    # and pre-cast weights to the activation dtype.
    wq_t = params["wq"].T.astype(dt)                       # (c, c)
    wk_t = params["wkv"][:c].T.astype(dt)                  # (d, c)
    wv_t = params["wkv"][c:].T.astype(dt)                  # (d, c)
    wp_t = params["wp"].T.astype(dt)                       # (c, c)
    bq = params["bq"].reshape(1, c).astype(jnp.float32)
    bk = params["bkv"][:c].reshape(1, c).astype(jnp.float32)
    bv = params["bkv"][c:].reshape(1, c).astype(jnp.float32)
    bp = params["bp"].reshape(1, c).astype(jnp.float32)

    tn = _pick_q_tile(n)
    grid = (b, n // tn)

    kernel = functools.partial(_mha_kernel, num_heads, head_dim, scale)

    out, attn_hnm = pl.pallas_call(
        kernel,
        out_shape=(
            jax.ShapeDtypeStruct((b, n, c), dt),
            # Kernel-side attention layout: (b, heads, n, m)  -> lane-dense.
            jax.ShapeDtypeStruct((b, num_heads, n, m), dt),
        ),
        grid_spec=pltpu.PrefetchScalarGridSpec(
            num_scalar_prefetch=0,
            grid=grid,
            in_specs=[
                pl.BlockSpec((1, tn, c), lambda i, qi: (i, qi, 0)),   # x (q tile)
                pl.BlockSpec((1, m, d), lambda i, qi: (i, 0, 0)),     # y (full m)
                pl.BlockSpec((c, c), lambda i, qi: (0, 0)),           # wq_t
                pl.BlockSpec((1, c), lambda i, qi: (0, 0)),           # bq
                pl.BlockSpec((d, c), lambda i, qi: (0, 0)),           # wk_t
                pl.BlockSpec((1, c), lambda i, qi: (0, 0)),           # bk
                pl.BlockSpec((d, c), lambda i, qi: (0, 0)),           # wv_t
                pl.BlockSpec((1, c), lambda i, qi: (0, 0)),           # bv
                pl.BlockSpec((c, c), lambda i, qi: (0, 0)),           # wp_t
                pl.BlockSpec((1, c), lambda i, qi: (0, 0)),           # bp
            ],
            out_specs=[
                pl.BlockSpec((1, tn, c), lambda i, qi: (i, qi, 0)),
                pl.BlockSpec((1, num_heads, tn, m), lambda i, qi: (i, 0, qi, 0)),
            ],
        ),
        compiler_params=pltpu.CompilerParams(
            dimension_semantics=("parallel", "parallel"),
            vmem_limit_bytes=32 * 1024 * 1024,
        ),
    )(x, y, wq_t, bq, wk_t, bk, wv_t, bv, wp_t, bp)

    # Transpose back to the PyTorch-exact (b, n, m, h) layout outside the kernel.
    attn = jnp.transpose(attn_hnm, (0, 2, 3, 1))
    return out, attn


def multi_head_attention_ref(x, y, params, num_heads):
    """Pure-JAX reference matching the PyTorch forward (mask=None)."""
    b, n, c = x.shape
    _, m, d = y.shape
    hd = c // num_heads
    scale = hd ** (-0.5)
    q = (x @ params["wq"].T + params["bq"]).reshape(b, n, num_heads, hd)
    kv = (y @ params["wkv"].T + params["bkv"]).reshape(b, m, 2, num_heads, hd)
    k, v = kv[:, :, 0], kv[:, :, 1]
    att = jnp.einsum('bnhd,bmhd->bnmh', q, k) * scale
    att = jax.nn.softmax(att, axis=2)
    out = jnp.einsum('bnmh,bmhd->bnhd', att, v).reshape(b, n, c)
    out = out @ params["wp"].T + params["bp"]
    return out, att


if __name__ == "__main__":
    # Small shapes: batch=2, n=m=8 tokens, dim_self=dim_ref=32, heads=4.
    b, n, m = 2, 8, 8
    dim_self, dim_ref, num_heads = 32, 32, 4

    key = jax.random.PRNGKey(0)
    keys = jax.random.split(key, 8)
    params = {
        "wq":  0.1 * jax.random.normal(keys[0], (dim_self, dim_self), jnp.float32),
        "bq":  0.1 * jax.random.normal(keys[1], (dim_self,), jnp.float32),
        "wkv": 0.1 * jax.random.normal(keys[2], (2 * dim_self, dim_ref), jnp.float32),
        "bkv": 0.1 * jax.random.normal(keys[3], (2 * dim_self,), jnp.float32),
        "wp":  0.1 * jax.random.normal(keys[4], (dim_self, dim_self), jnp.float32),
        "bp":  0.1 * jax.random.normal(keys[5], (dim_self,), jnp.float32),
    }
    x = jax.random.normal(keys[6], (b, n, dim_self), jnp.float32)
    y = jax.random.normal(keys[7], (b, m, dim_ref), jnp.float32)

    out, attn = multi_head_attention(x, y, params, num_heads)
    out = jax.block_until_ready(out)
    attn = jax.block_until_ready(attn)

    out_ref, attn_ref = multi_head_attention_ref(x, y, params, num_heads)
    assert out.shape == (b, n, dim_self)
    assert attn.shape == (b, n, m, num_heads)
    # Tolerance loosened slightly vs. exact-divide softmax because the kernel
    # uses the EUP approximate reciprocal for the softmax normalization.
    assert jnp.allclose(out, out_ref, atol=2e-3, rtol=2e-3)
    assert jnp.allclose(attn, attn_ref, atol=2e-3, rtol=2e-3)

    print("KERNEL_OK")
</pallas_src>

<mosaic_0001>
module attributes {stable_mosaic.version = 11 : i64} {
  func.func @_mha_kernel(%arg0: i32, %arg1: i32, %arg2: memref<1x8x32xf32, #tpu.memory_space<vmem>>, %arg3: memref<1x8x32xf32, #tpu.memory_space<vmem>>, %arg4: memref<32x32xf32, #tpu.memory_space<vmem>>, %arg5: memref<1x32xf32, #tpu.memory_space<vmem>>, %arg6: memref<32x32xf32, #tpu.memory_space<vmem>>, %arg7: memref<1x32xf32, #tpu.memory_space<vmem>>, %arg8: memref<32x32xf32, #tpu.memory_space<vmem>>, %arg9: memref<1x32xf32, #tpu.memory_space<vmem>>, %arg10: memref<32x32xf32, #tpu.memory_space<vmem>>, %arg11: memref<1x32xf32, #tpu.memory_space<vmem>>, %arg12: memref<1x8x32xf32, #tpu.memory_space<vmem>>, %arg13: memref<1x4x8x8xf32, #tpu.memory_space<vmem>>) attributes {dimension_semantics = [#tpu.dimension_semantics<parallel>, #tpu.dimension_semantics<parallel>], iteration_bounds = array<i64: 2, 1>, scalar_prefetch = 0 : i64, scratch_operands = 0 : i64, tpu.core_type = #tpu.core_type<tc>, window_params = [{transform_indices = @transform_0, window_bounds = array<i64: 1, 8, 32>}, {transform_indices = @transform_1, window_bounds = array<i64: 1, 8, 32>}, {pipeline_mode = #tpu.pipeline_mode<synchronous>, transform_indices = @transform_2, window_bounds = array<i64: 32, 32>}, {pipeline_mode = #tpu.pipeline_mode<synchronous>, transform_indices = @transform_3, window_bounds = array<i64: 1, 32>}, {pipeline_mode = #tpu.pipeline_mode<synchronous>, transform_indices = @transform_4, window_bounds = array<i64: 32, 32>}, {pipeline_mode = #tpu.pipeline_mode<synchronous>, transform_indices = @transform_5, window_bounds = array<i64: 1, 32>}, {pipeline_mode = #tpu.pipeline_mode<synchronous>, transform_indices = @transform_6, window_bounds = array<i64: 32, 32>}, {pipeline_mode = #tpu.pipeline_mode<synchronous>, transform_indices = @transform_7, window_bounds = array<i64: 1, 32>}, {pipeline_mode = #tpu.pipeline_mode<synchronous>, transform_indices = @transform_8, window_bounds = array<i64: 32, 32>}, {pipeline_mode = #tpu.pipeline_mode<synchronous>, transform_indices = @transform_9, window_bounds = array<i64: 1, 32>}, {transform_indices = @transform_10, window_bounds = array<i64: 1, 8, 32>}, {transform_indices = @transform_11, window_bounds = array<i64: 1, 4, 8, 8>}]} {
    %c0 = arith.constant 0 : index
    %c0_0 = arith.constant 0 : index
    %c0_1 = arith.constant 0 : index
    %0 = vector.load %arg2[%c0, %c0_0, %c0_1] : memref<1x8x32xf32, #tpu.memory_space<vmem>>, vector<1x8x32xf32>
    %1 = vector.shape_cast %0 : vector<1x8x32xf32> to vector<8x32xf32>
    %c0_2 = arith.constant 0 : index
    %c0_3 = arith.constant 0 : index
    %c0_4 = arith.constant 0 : index
    %2 = vector.load %arg3[%c0_2, %c0_3, %c0_4] : memref<1x8x32xf32, #tpu.memory_space<vmem>>, vector<1x8x32xf32>
    %3 = vector.shape_cast %2 : vector<1x8x32xf32> to vector<8x32xf32>
    %c0_5 = arith.constant 0 : index
    %c0_6 = arith.constant 0 : index
    %4 = vector.load %arg4[%c0_5, %c0_6] : memref<32x32xf32, #tpu.memory_space<vmem>>, vector<32x32xf32>
    %cst = arith.constant dense<0.000000e+00> : vector<8x32xf32>
    %5 = tpu.matmul %1, %4, %cst {dimension_numbers = #tpu.dot_dimension_numbers<[1], [0], [0], [1], [0, 0, 1, 1], [], []>} : vector<8x32xf32>, vector<32x32xf32>, vector<8x32xf32> -> vector<8x32xf32>
    %c0_7 = arith.constant 0 : index
    %c0_8 = arith.constant 0 : index
    %6 = vector.load %arg5[%c0_7, %c0_8] : memref<1x32xf32, #tpu.memory_space<vmem>>, vector<1x32xf32>
    %7 = vector.shape_cast %6 : vector<1x32xf32> to vector<32xf32>
    %8 = vector.shape_cast %7 : vector<32xf32> to vector<1x32xf32>
    %9 = vector.broadcast %8 : vector<1x32xf32> to vector<8x32xf32>
    %10 = arith.addf %5, %9 : vector<8x32xf32>
    %cst_9 = arith.constant 0.353553385 : f32
    %11 = vector.broadcast %cst_9 : f32 to vector<8x32xf32>
    %12 = arith.mulf %10, %11 : vector<8x32xf32>
    %c0_10 = arith.constant 0 : index
    %c0_11 = arith.constant 0 : index
    %13 = vector.load %arg6[%c0_10, %c0_11] : memref<32x32xf32, #tpu.memory_space<vmem>>, vector<32x32xf32>
    %cst_12 = arith.constant dense<0.000000e+00> : vector<8x32xf32>
    %14 = tpu.matmul %3, %13, %cst_12 {dimension_numbers = #tpu.dot_dimension_numbers<[1], [0], [0], [1], [0, 0, 1, 1], [], []>} : vector<8x32xf32>, vector<32x32xf32>, vector<8x32xf32> -> vector<8x32xf32>
    %c0_13 = arith.constant 0 : index
    %c0_14 = arith.constant 0 : index
    %15 = vector.load %arg7[%c0_13, %c0_14] : memref<1x32xf32, #tpu.memory_space<vmem>>, vector<1x32xf32>
    %16 = vector.shape_cast %15 : vector<1x32xf32> to vector<32xf32>
    %17 = vector.shape_cast %16 : vector<32xf32> to vector<1x32xf32>
    %18 = vector.broadcast %17 : vector<1x32xf32> to vector<8x32xf32>
    %19 = arith.addf %14, %18 : vector<8x32xf32>
    %c0_15 = arith.constant 0 : index
    %c0_16 = arith.constant 0 : index
    %20 = vector.load %arg8[%c0_15, %c0_16] : memref<32x32xf32, #tpu.memory_space<vmem>>, vector<32x32xf32>
    %cst_17 = arith.constant dense<0.000000e+00> : vector<8x32xf32>
    %21 = tpu.matmul %3, %20, %cst_17 {dimension_numbers = #tpu.dot_dimension_numbers<[1], [0], [0], [1], [0, 0, 1, 1], [], []>} : vector<8x32xf32>, vector<32x32xf32>, vector<8x32xf32> -> vector<8x32xf32>
    %c0_18 = arith.constant 0 : index
    %c0_19 = arith.constant 0 : index
    %22 = vector.load %arg9[%c0_18, %c0_19] : memref<1x32xf32, #tpu.memory_space<vmem>>, vector<1x32xf32>
    %23 = vector.shape_cast %22 : vector<1x32xf32> to vector<32xf32>
    %24 = vector.shape_cast %23 : vector<32xf32> to vector<1x32xf32>
    %25 = vector.broadcast %24 : vector<1x32xf32> to vector<8x32xf32>
    %26 = arith.addf %21, %25 : vector<8x32xf32>
    %cst_20 = arith.constant 0.000000e+00 : f32
    %27 = vector.broadcast %cst_20 : f32 to vector<8x32xf32>
    %28 = vector.extract_strided_slice %12 {offsets = [0, 0], sizes = [8, 8], strides = [1, 1]} : vector<8x32xf32> to vector<8x8xf32>
    %29 = vector.extract_strided_slice %19 {offsets = [0, 0], sizes = [8, 8], strides = [1, 1]} : vector<8x32xf32> to vector<8x8xf32>
    %30 = vector.extract_strided_slice %26 {offsets = [0, 0], sizes = [8, 8], strides = [1, 1]} : vector<8x32xf32> to vector<8x8xf32>
    %cst_21 = arith.constant dense<0.000000e+00> : vector<8x8xf32>
    %31 = tpu.matmul %28, %29, %cst_21 {dimension_numbers = #tpu.dot_dimension_numbers<[1], [1], [0], [0], [0, 0, 1, 0], [], []>} : vector<8x8xf32>, vector<8x8xf32>, vector<8x8xf32> -> vector<8x8xf32>
    %cst_22 = arith.constant dense<0xFF800000> : vector<8xf32>
    %32 = vector.multi_reduction <maximumf>, %31, %cst_22 [1] : vector<8x8xf32> to vector<8xf32>
    %33 = vector.shape_cast %32 : vector<8xf32> to vector<8x1xf32>
    %34 = vector.broadcast %33 : vector<8x1xf32> to vector<8x8xf32>
    %35 = arith.subf %31, %34 : vector<8x8xf32>
    %36 = math.exp %35 : vector<8x8xf32>
    %cst_23 = arith.constant dense<0.000000e+00> : vector<8xf32>
    %37 = vector.multi_reduction <add>, %36, %cst_23 [1] : vector<8x8xf32> to vector<8xf32>
    %38 = vector.shape_cast %37 : vector<8xf32> to vector<8x1xf32>
    %39 = tpu.reciprocal %38 {approx = true} : vector<8x1xf32> -> vector<8x1xf32>
    %40 = vector.broadcast %39 : vector<8x1xf32> to vector<8x8xf32>
    %41 = arith.mulf %36, %40 : vector<8x8xf32>
    %c0_24 = arith.constant 0 : index
    %c0_25 = arith.constant 0 : index
    %c0_26 = arith.constant 0 : index
    %c0_27 = arith.constant 0 : index
    %42 = vector.load %arg13[%c0_24, %c0_25, %c0_26, %c0_27] : memref<1x4x8x8xf32, #tpu.memory_space<vmem>>, vector<1x1x8x8xf32>
    %43 = vector.shape_cast %42 : vector<1x1x8x8xf32> to vector<8x8xf32>
    %44 = vector.shape_cast %41 : vector<8x8xf32> to vector<1x1x8x8xf32>
    tpu.vector_store %arg13[%c0_24, %c0_25, %c0_26, %c0_27], %44 {strides = array<i32>} : memref<1x4x8x8xf32, #tpu.memory_space<vmem>>, vector<1x1x8x8xf32>,
    %cst_28 = arith.constant dense<0.000000e+00> : vector<8x8xf32>
    %45 = tpu.matmul %41, %30, %cst_28 {dimension_numbers = #tpu.dot_dimension_numbers<[1], [0], [0], [1], [0, 0, 1, 1], [], []>} : vector<8x8xf32>, vector<8x8xf32>, vector<8x8xf32> -> vector<8x8xf32>
    %c0_29 = arith.constant 0 : index
    %c0_30 = arith.constant 0 : index
    %46 = vector.load %arg10[%c0_29, %c0_30] : memref<32x32xf32, #tpu.memory_space<vmem>>, vector<8x32xf32>
    %cst_31 = arith.constant dense<0.000000e+00> : vector<8x32xf32>
    %47 = tpu.matmul %45, %46, %cst_31 {dimension_numbers = #tpu.dot_dimension_numbers<[1], [0], [0], [1], [0, 0, 1, 1], [], []>} : vector<8x8xf32>, vector<8x32xf32>, vector<8x32xf32> -> vector<8x32xf32>
    %48 = arith.addf %27, %47 : vector<8x32xf32>
    %49 = vector.extract_strided_slice %12 {offsets = [0, 8], sizes = [8, 8], strides = [1, 1]} : vector<8x32xf32> to vector<8x8xf32>
    %50 = vector.extract_strided_slice %19 {offsets = [0, 8], sizes = [8, 8], strides = [1, 1]} : vector<8x32xf32> to vector<8x8xf32>
    %51 = vector.extract_strided_slice %26 {offsets = [0, 8], sizes = [8, 8], strides = [1, 1]} : vector<8x32xf32> to vector<8x8xf32>
    %cst_32 = arith.constant dense<0.000000e+00> : vector<8x8xf32>
    %52 = tpu.matmul %49, %50, %cst_32 {dimension_numbers = #tpu.dot_dimension_numbers<[1], [1], [0], [0], [0, 0, 1, 0], [], []>} : vector<8x8xf32>, vector<8x8xf32>, vector<8x8xf32> -> vector<8x8xf32>
    %cst_33 = arith.constant dense<0xFF800000> : vector<8xf32>
    %53 = vector.multi_reduction <maximumf>, %52, %cst_33 [1] : vector<8x8xf32> to vector<8xf32>
    %54 = vector.shape_cast %53 : vector<8xf32> to vector<8x1xf32>
    %55 = vector.broadcast %54 : vector<8x1xf32> to vector<8x8xf32>
    %56 = arith.subf %52, %55 : vector<8x8xf32>
    %57 = math.exp %56 : vector<8x8xf32>
    %cst_34 = arith.constant dense<0.000000e+00> : vector<8xf32>
    %58 = vector.multi_reduction <add>, %57, %cst_34 [1] : vector<8x8xf32> to vector<8xf32>
    %59 = vector.shape_cast %58 : vector<8xf32> to vector<8x1xf32>
    %60 = tpu.reciprocal %59 {approx = true} : vector<8x1xf32> -> vector<8x1xf32>
    %61 = vector.broadcast %60 : vector<8x1xf32> to vector<8x8xf32>
    %62 = arith.mulf %57, %61 : vector<8x8xf32>
    %c0_35 = arith.constant 0 : index
    %c1 = arith.constant 1 : index
    %c0_36 = arith.constant 0 : index
    %c0_37 = arith.constant 0 : index
    %63 = vector.load %arg13[%c0_35, %c1, %c0_36, %c0_37] : memref<1x4x8x8xf32, #tpu.memory_space<vmem>>, vector<1x1x8x8xf32>
    %64 = vector.shape_cast %63 : vector<1x1x8x8xf32> to vector<8x8xf32>
    %65 = vector.shape_cast %62 : vector<8x8xf32> to vector<1x1x8x8xf32>
    tpu.vector_store %arg13[%c0_35, %c1, %c0_36, %c0_37], %65 {strides = array<i32>} : memref<1x4x8x8xf32, #tpu.memory_space<vmem>>, vector<1x1x8x8xf32>,
    %cst_38 = arith.constant dense<0.000000e+00> : vector<8x8xf32>
    %66 = tpu.matmul %62, %51, %cst_38 {dimension_numbers = #tpu.dot_dimension_numbers<[1], [0], [0], [1], [0, 0, 1, 1], [], []>} : vector<8x8xf32>, vector<8x8xf32>, vector<8x8xf32> -> vector<8x8xf32>
    %c8 = arith.constant 8 : index
    %c0_39 = arith.constant 0 : index
    %67 = vector.load %arg10[%c8, %c0_39] : memref<32x32xf32, #tpu.memory_space<vmem>>, vector<8x32xf32>
    %cst_40 = arith.constant dense<0.000000e+00> : vector<8x32xf32>
    %68 = tpu.matmul %66, %67, %cst_40 {dimension_numbers = #tpu.dot_dimension_numbers<[1], [0], [0], [1], [0, 0, 1, 1], [], []>} : vector<8x8xf32>, vector<8x32xf32>, vector<8x32xf32> -> vector<8x32xf32>
    %69 = arith.addf %48, %68 : vector<8x32xf32>
    %70 = vector.extract_strided_slice %12 {offsets = [0, 16], sizes = [8, 8], strides = [1, 1]} : vector<8x32xf32> to vector<8x8xf32>
    %71 = vector.extract_strided_slice %19 {offsets = [0, 16], sizes = [8, 8], strides = [1, 1]} : vector<8x32xf32> to vector<8x8xf32>
    %72 = vector.extract_strided_slice %26 {offsets = [0, 16], sizes = [8, 8], strides = [1, 1]} : vector<8x32xf32> to vector<8x8xf32>
    %cst_41 = arith.constant dense<0.000000e+00> : vector<8x8xf32>
    %73 = tpu.matmul %70, %71, %cst_41 {dimension_numbers = #tpu.dot_dimension_numbers<[1], [1], [0], [0], [0, 0, 1, 0], [], []>} : vector<8x8xf32>, vector<8x8xf32>, vector<8x8xf32> -> vector<8x8xf32>
    %cst_42 = arith.constant dense<0xFF800000> : vector<8xf32>
    %74 = vector.multi_reduction <maximumf>, %73, %cst_42 [1] : vector<8x8xf32> to vector<8xf32>
    %75 = vector.shape_cast %74 : vector<8xf32> to vector<8x1xf32>
    %76 = vector.broadcast %75 : vector<8x1xf32> to vector<8x8xf32>
    %77 = arith.subf %73, %76 : vector<8x8xf32>
    %78 = math.exp %77 : vector<8x8xf32>
    %cst_43 = arith.constant dense<0.000000e+00> : vector<8xf32>
    %79 = vector.multi_reduction <add>, %78, %cst_43 [1] : vector<8x8xf32> to vector<8xf32>
    %80 = vector.shape_cast %79 : vector<8xf32> to vector<8x1xf32>
    %81 = tpu.reciprocal %80 {approx = true} : vector<8x1xf32> -> vector<8x1xf32>
    %82 = vector.broadcast %81 : vector<8x1xf32> to vector<8x8xf32>
    %83 = arith.mulf %78, %82 : vector<8x8xf32>
    %c0_44 = arith.constant 0 : index
    %c2 = arith.constant 2 : index
    %c0_45 = arith.constant 0 : index
    %c0_46 = arith.constant 0 : index
    %84 = vector.load %arg13[%c0_44, %c2, %c0_45, %c0_46] : memref<1x4x8x8xf32, #tpu.memory_space<vmem>>, vector<1x1x8x8xf32>
    %85 = vector.shape_cast %84 : vector<1x1x8x8xf32> to vector<8x8xf32>
    %86 = vector.shape_cast %83 : vector<8x8xf32> to vector<1x1x8x8xf32>
    tpu.vector_store %arg13[%c0_44, %c2, %c0_45, %c0_46], %86 {strides = array<i32>} : memref<1x4x8x8xf32, #tpu.memory_space<vmem>>, vector<1x1x8x8xf32>,
    %cst_47 = arith.constant dense<0.000000e+00> : vector<8x8xf32>
    %87 = tpu.matmul %83, %72, %cst_47 {dimension_numbers = #tpu.dot_dimension_numbers<[1], [0], [0], [1], [0, 0, 1, 1], [], []>} : vector<8x8xf32>, vector<8x8xf32>, vector<8x8xf32> -> vector<8x8xf32>
    %c16 = arith.constant 16 : index
    %c0_48 = arith.constant 0 : index
    %88 = vector.load %arg10[%c16, %c0_48] : memref<32x32xf32, #tpu.memory_space<vmem>>, vector<8x32xf32>
    %cst_49 = arith.constant dense<0.000000e+00> : vector<8x32xf32>
    %89 = tpu.matmul %87, %88, %cst_49 {dimension_numbers = #tpu.dot_dimension_numbers<[1], [0], [0], [1], [0, 0, 1, 1], [], []>} : vector<8x8xf32>, vector<8x32xf32>, vector<8x32xf32> -> vector<8x32xf32>
    %90 = arith.addf %69, %89 : vector<8x32xf32>
    %91 = vector.extract_strided_slice %12 {offsets = [0, 24], sizes = [8, 8], strides = [1, 1]} : vector<8x32xf32> to vector<8x8xf32>
    %92 = vector.extract_strided_slice %19 {offsets = [0, 24], sizes = [8, 8], strides = [1, 1]} : vector<8x32xf32> to vector<8x8xf32>
    %93 = vector.extract_strided_slice %26 {offsets = [0, 24], sizes = [8, 8], strides = [1, 1]} : vector<8x32xf32> to vector<8x8xf32>
    %cst_50 = arith.constant dense<0.000000e+00> : vector<8x8xf32>
    %94 = tpu.matmul %91, %92, %cst_50 {dimension_numbers = #tpu.dot_dimension_numbers<[1], [1], [0], [0], [0, 0, 1, 0], [], []>} : vector<8x8xf32>, vector<8x8xf32>, vector<8x8xf32> -> vector<8x8xf32>
    %cst_51 = arith.constant dense<0xFF800000> : vector<8xf32>
    %95 = vector.multi_reduction <maximumf>, %94, %cst_51 [1] : vector<8x8xf32> to vector<8xf32>
    %96 = vector.shape_cast %95 : vector<8xf32> to vector<8x1xf32>
    %97 = vector.broadcast %96 : vector<8x1xf32> to vector<8x8xf32>
    %98 = arith.subf %94, %97 : vector<8x8xf32>
    %99 = math.exp %98 : vector<8x8xf32>
    %cst_52 = arith.constant dense<0.000000e+00> : vector<8xf32>
    %100 = vector.multi_reduction <add>, %99, %cst_52 [1] : vector<8x8xf32> to vector<8xf32>
    %101 = vector.shape_cast %100 : vector<8xf32> to vector<8x1xf32>
    %102 = tpu.reciprocal %101 {approx = true} : vector<8x1xf32> -> vector<8x1xf32>
    %103 = vector.broadcast %102 : vector<8x1xf32> to vector<8x8xf32>
    %104 = arith.mulf %99, %103 : vector<8x8xf32>
    %c0_53 = arith.constant 0 : index
    %c3 = arith.constant 3 : index
    %c0_54 = arith.constant 0 : index
    %c0_55 = arith.constant 0 : index
    %105 = vector.load %arg13[%c0_53, %c3, %c0_54, %c0_55] : memref<1x4x8x8xf32, #tpu.memory_space<vmem>>, vector<1x1x8x8xf32>
    %106 = vector.shape_cast %105 : vector<1x1x8x8xf32> to vector<8x8xf32>
    %107 = vector.shape_cast %104 : vector<8x8xf32> to vector<1x1x8x8xf32>
    tpu.vector_store %arg13[%c0_53, %c3, %c0_54, %c0_55], %107 {strides = array<i32>} : memref<1x4x8x8xf32, #tpu.memory_space<vmem>>, vector<1x1x8x8xf32>,
    %cst_56 = arith.constant dense<0.000000e+00> : vector<8x8xf32>
    %108 = tpu.matmul %104, %93, %cst_56 {dimension_numbers = #tpu.dot_dimension_numbers<[1], [0], [0], [1], [0, 0, 1, 1], [], []>} : vector<8x8xf32>, vector<8x8xf32>, vector<8x8xf32> -> vector<8x8xf32>
    %c24 = arith.constant 24 : index
    %c0_57 = arith.constant 0 : index
    %109 = vector.load %arg10[%c24, %c0_57] : memref<32x32xf32, #tpu.memory_space<vmem>>, vector<8x32xf32>
    %cst_58 = arith.constant dense<0.000000e+00> : vector<8x32xf32>
    %110 = tpu.matmul %108, %109, %cst_58 {dimension_numbers = #tpu.dot_dimension_numbers<[1], [0], [0], [1], [0, 0, 1, 1], [], []>} : vector<8x8xf32>, vector<8x32xf32>, vector<8x32xf32> -> vector<8x32xf32>
    %111 = arith.addf %90, %110 : vector<8x32xf32>
    %c0_59 = arith.constant 0 : index
    %c0_60 = arith.constant 0 : index
    %112 = vector.load %arg11[%c0_59, %c0_60] : memref<1x32xf32, #tpu.memory_space<vmem>>, vector<1x32xf32>
    %113 = vector.shape_cast %112 : vector<1x32xf32> to vector<32xf32>
    %114 = vector.shape_cast %113 : vector<32xf32> to vector<1x32xf32>
    %115 = vector.broadcast %114 : vector<1x32xf32> to vector<8x32xf32>
    %116 = arith.addf %111, %115 : vector<8x32xf32>
    %c0_61 = arith.constant 0 : index
    %c0_62 = arith.constant 0 : index
    %c0_63 = arith.constant 0 : index
    %117 = vector.load %arg12[%c0_61, %c0_62, %c0_63] : memref<1x8x32xf32, #tpu.memory_space<vmem>>, vector<1x8x32xf32>
    %118 = vector.shape_cast %117 : vector<1x8x32xf32> to vector<8x32xf32>
    %119 = vector.shape_cast %116 : vector<8x32xf32> to vector<1x8x32xf32>
    tpu.vector_store %arg12[%c0_61, %c0_62, %c0_63], %119 {strides = array<i32>} : memref<1x8x32xf32, #tpu.memory_space<vmem>>, vector<1x8x32xf32>,
    return
  }
  func.func @transform_0(%arg0: i32, %arg1: i32) -> (i32, i32, i32) {
    %c0_i32 = arith.constant 0 : i32
    %c0_i32_0 = arith.constant 0 : i32
    return %arg0, %arg1, %c0_i32 : i32, i32, i32
  }
  func.func @transform_1(%arg0: i32, %arg1: i32) -> (i32, i32, i32) {
    %c0_i32 = arith.constant 0 : i32
    %c0_i32_0 = arith.constant 0 : i32
    %c0_i32_1 = arith.constant 0 : i32
    return %arg0, %c0_i32, %c0_i32_0 : i32, i32, i32
  }
  func.func @transform_2(%arg0: i32, %arg1: i32) -> (i32, i32) {
    %c0_i32 = arith.constant 0 : i32
    %c0_i32_0 = arith.constant 0 : i32
    %c0_i32_1 = arith.constant 0 : i32
    return %c0_i32, %c0_i32_0 : i32, i32
  }
  func.func @transform_3(%arg0: i32, %arg1: i32) -> (i32, i32) {
    %c0_i32 = arith.constant 0 : i32
    %c0_i32_0 = arith.constant 0 : i32
    %c0_i32_1 = arith.constant 0 : i32
    return %c0_i32, %c0_i32_0 : i32, i32
  }
  func.func @transform_4(%arg0: i32, %arg1: i32) -> (i32, i32) {
    %c0_i32 = arith.constant 0 : i32
    %c0_i32_0 = arith.constant 0 : i32
    %c0_i32_1 = arith.constant 0 : i32
    return %c0_i32, %c0_i32_0 : i32, i32
  }
  func.func @transform_5(%arg0: i32, %arg1: i32) -> (i32, i32) {
    %c0_i32 = arith.constant 0 : i32
    %c0_i32_0 = arith.constant 0 : i32
    %c0_i32_1 = arith.constant 0 : i32
    return %c0_i32, %c0_i32_0 : i32, i32
  }
  func.func @transform_6(%arg0: i32, %arg1: i32) -> (i32, i32) {
    %c0_i32 = arith.constant 0 : i32
    %c0_i32_0 = arith.constant 0 : i32
    %c0_i32_1 = arith.constant 0 : i32
    return %c0_i32, %c0_i32_0 : i32, i32
  }
  func.func @transform_7(%arg0: i32, %arg1: i32) -> (i32, i32) {
    %c0_i32 = arith.constant 0 : i32
    %c0_i32_0 = arith.constant 0 : i32
    %c0_i32_1 = arith.constant 0 : i32
    return %c0_i32, %c0_i32_0 : i32, i32
  }
  func.func @transform_8(%arg0: i32, %arg1: i32) -> (i32, i32) {
    %c0_i32 = arith.constant 0 : i32
    %c0_i32_0 = arith.constant 0 : i32
    %c0_i32_1 = arith.constant 0 : i32
    return %c0_i32, %c0_i32_0 : i32, i32
  }
  func.func @transform_9(%arg0: i32, %arg1: i32) -> (i32, i32) {
    %c0_i32 = arith.constant 0 : i32
    %c0_i32_0 = arith.constant 0 : i32
    %c0_i32_1 = arith.constant 0 : i32
    return %c0_i32, %c0_i32_0 : i32, i32
  }
  func.func @transform_10(%arg0: i32, %arg1: i32) -> (i32, i32, i32) {
    %c0_i32 = arith.constant 0 : i32
    %c0_i32_0 = arith.constant 0 : i32
    return %arg0, %arg1, %c0_i32 : i32, i32, i32
  }
  func.func @transform_11(%arg0: i32, %arg1: i32) -> (i32, i32, i32, i32) {
    %c0_i32 = arith.constant 0 : i32
    %c0_i32_0 = arith.constant 0 : i32
    %c0_i32_1 = arith.constant 0 : i32
    return %arg0, %c0_i32, %arg1, %c0_i32_0 : i32, i32, i32, i32
  }
}

</mosaic_0001>

<bundles_post_ra>
// kernel: tpu_custom_call.1
= control target key start
LH: loop header
LB: loop body
LE: loop exit
PB: predicated region body
PF: predicated region fallthrough
CT: control target
= control target key end

     0   :  { %s3183_s0 = inlined_call_operand.hbm [shape: f32[2,8,32], index: 0, kind: input, shape index: {}]   ;;  %s3184_s1 = inlined_call_operand.hbm [shape: f32[2,8,32], index: 1, kind: input, shape index: {}]   ;;  %s3185_s2 = inlined_call_operand.hbm [shape: f32[32,32], index: 2, kind: input, shape index: {}]   ;;  %s3186_s3 = inlined_call_operand.vmem [shape: f32[1,32], index: 3, kind: input, shape index: {}]   ;;  %s3187_s4 = inlined_call_operand.hbm [shape: f32[32,32], index: 4, kind: input, shape index: {}]   ;;  %s3188_s5 = inlined_call_operand.vmem [shape: f32[1,32], index: 5, kind: input, shape index: {}]   ;;  %s3189_s6 = inlined_call_operand.hbm [shape: f32[32,32], index: 6, kind: input, shape index: {}]   ;;  %s3190_s7 = inlined_call_operand.vmem [shape: f32[1,32], index: 7, kind: input, shape index: {}]   ;;  %s3191_s8 = inlined_call_operand.hbm [shape: f32[32,32], index: 8, kind: input, shape index: {}]   ;;  %s3192_s9 = inlined_call_operand.vmem [shape: f32[1,32], index: 9, kind: input, shape index: {}]   ;;  %s3193_s10 = inlined_call_operand.hbm [shape: f32[2,8,32], index: 10, kind: output, shape index: {0}]   ;;  %s3194_s11 = inlined_call_operand.hbm [shape: f32[2,4,8,8], index: 11, kind: output, shape index: {1}]  }
   0x1   :  { %3203 = sst [smem:[#allocation25_spill]] %s3185_s2 }
   0x2   :  { %3204 = sst [smem:[#allocation26_spill]] %s3187_s4 }
   0x3   :  { %3205 = sst [smem:[#allocation27_spill]] %s3189_s6 }
   0x4   :  { %3206 = sst [smem:[#allocation28_spill]] %s3190_s7 }
   0x5   :  { %3207 = sst [smem:[#allocation29_spill]] %s3191_s8 }
   0x6   :  { %3208 = sst [smem:[#allocation30_spill]] %s3192_s9 }
   0x7   :  { %3209 = sst [smem:[#allocation31_spill]] %s3193_s10 }
   0x8   :  { %3210 = sst [smem:[#allocation32_spill]] %s3194_s11 }
   0x9   :  { %17 = vsyncpa [#allocation3], 0 }
   0xa   :  { %19 = vsyncpa [#allocation3 + $0x1], 0 }
   0xb   :  { %20 = vsyncpa [#allocation6], 0 }
   0xc   :  { %22 = vsyncpa [#allocation6 + $0x1], 0 }
   0xd   :  { %23 = vsyncpa [#allocation9], 0 }
   0xe   :  { %24 = vsyncpa [#allocation12], 0 }
   0xf   :  { %25 = vsyncpa [#allocation4], 0 }
  0x10   :  { %27 = vsyncpa [#allocation4 + $0x1], 0 }
  0x11   :  { %28 = vsyncpa [#allocation15], 0 }
  0x12   :  { %30 = vsyncpa [#allocation15 + $0x1], 0  ;;  %s2689_s17 = smov 0   ;;  %s2691_s18 = smov 0  }
  0x13   :  { %s2693_s19 = smov 0   ;;  %s2695_s20 = smov 0  }
  0x14   :  { %s2697_s21 = smov 0   ;;  %s2699_s22 = smov 0  }
  0x15 LB: > { %3211 = sst [smem:[#allocation23_spill]] %s2601_s20  ;;  %s2720_s23 = sadd.s32 4294967295, %s2609_s22   ;;  %s2609_s22 = sphi %s2699_s22, %s36_s22   ;;  %s2605_s21 = sphi %s2697_s21, %s3247_s21   ;;  %s2601_s20 = sphi %s2695_s20, %s3246_s20   ;;  %s2597_s19 = sphi %s2693_s19, %s3245_s19   ;;  %s2593_s18 = sphi %s2691_s18, %s3244_s18   ;;  %s2589_s17 = sphi %s2689_s17, %s3243_s17  }
  0x16   : > { %p1965_p0 = scmp.ge.s32.totalorder %s2609_s22, 1  ;;  %p3198_p1 = scmp.eq.s32.totalorder %s2720_s23, 0 }
  0x17   : > { %p331_p2 = scmp.lt.s32.totalorder %s2609_s22, 3  ;;  %s2611_s25 = smov [#allocation7]  }
  0x18   : > { %s343_s26 = sshll.u32 %s2611_s25, 4  ;;  %s2612_s28 = smov [#allocation8]   ;;  %s2729_s26 = int_to_ptr.vmem [resolvable:$true] %s343_s26 }
  0x19   : > { %p2725_p3 = pnand %p1965_p0, %p331_p2  ;;  %s359_s29 = sshll.u32 %s2612_s28, 4  ;;  %s2740_s29 = int_to_ptr.vmem [resolvable:$true] %s359_s29 }
  0x1a   : > { %s2613_s30 = smov [#allocation10]   ;;  %s3214_s2 = sld [smem:[#allocation25_spill]] }
  0x1b   : > { %s3212_s24 = scalar_select %p2725_p3, 1, 0 }
  0x1c   : > { %p2192_p4 = pneg %p2725_p3  ;;  %s2742_s12 = sshll.u32 %s2613_s30, 4  ;;  %s376_s12 = int_to_ptr.vmem [resolvable:$true] %s2742_s12 }
  0x1e   : > { %p2736_p6 = pnand %p2192_p4, %p3198_p1 }
  0x20   : > { %s2307_s15 = scalar_lea.hbm %s3214_s2, 512  ;;  %p2752_p8 = pneg %p2736_p6 }
  0x21   : > { %p2308_p7 = scmp.ne.s32.totalorder %s3214_s2, %s2307_s15  ;;  %p2314_p11 = scmp.lt.u32.totalorder %s2307_s15, %s3214_s2 }
  0x23   : > { %p2310_p9 = pnand %p2752_p8, %p2308_p7 }
  0x25   : > { %p2311_p10 = pneg %p2310_p9 }
  0x27   : > { %p2316_p12 = pnand %p2314_p11, %p2311_p10 }
  0x29   : > { %2319 = shalt.err (!%p2316_p12)
}
  0x2a   : > { %s2320_s13 = scalar_lea.vmem %s2729_s26, 512  ;;  %p2328_p4 = scmp.lt.s32.totalorder %s2729_s26, %s2729_s26 }
  0x2b   : > { %p2321_p13 = scmp.ne.s32.totalorder %s2729_s26, %s2320_s13  ;;  %p2329_p5 = scmp.lt.s32.totalorder %s2320_s13, %s2320_s13 }
  0x2d   : > { %p2323_p0 = pnand %p2321_p13, %p2752_p8  ;;  %p2330_p7 = por %p2329_p5, %p2328_p4 }
  0x2f   : > { %p2324_p2 = pneg %p2323_p0 }
  0x31   : > { %p2331_p9 = pnand %p2330_p7, %p2324_p2 }
  0x33   : > { %2334 = shalt.err (!%p2331_p9)
}
  0x34   : > { %s2614_s14 = smov 128   ;;  %s2615_s15 = smov 8  }
  0x35   : > { %2195 = dma.hbm_to_vmem [thread:$0]  (!%p2736_p6), %s3214_s2, 512, %s2729_s26, [#allocation6], %s2614_s14, %s2614_s14, %s2615_s15  }
  0x36   : > { %s3216_s4 = sld [smem:[#allocation26_spill]] }
  0x3c   : > { %s2335_s13 = scalar_lea.hbm %s3216_s4, 512 }
  0x3d   : > { %p2336_p5 = scmp.ne.s32.totalorder %s3216_s4, %s2335_s13  ;;  %p2342_p12 = scmp.lt.u32.totalorder %s2335_s13, %s3216_s4 }
  0x3f   : > { %p2338_p10 = pnand %p2336_p5, %p2752_p8 }
  0x41   : > { %p2339_p11 = pneg %p2338_p10 }
  0x43   : > { %p2344_p13 = pnand %p2342_p12, %p2339_p11 }
  0x45   : > { %2347 = shalt.err (!%p2344_p13)
}
  0x46   : > { %s2348_s26 = scalar_lea.vmem %s2740_s29, 512  ;;  %p2356_p7 = scmp.lt.s32.totalorder %s2740_s29, %s2740_s29 }
  0x47   : > { %p2349_p0 = scmp.ne.s32.totalorder %s2740_s29, %s2348_s26  ;;  %p2357_p9 = scmp.lt.s32.totalorder %s2348_s26, %s2348_s26 }
  0x49   : > { %p2351_p2 = pnand %p2349_p0, %p2752_p8  ;;  %p2358_p5 = por %p2357_p9, %p2356_p7 }
  0x4b   : > { %p2352_p4 = pneg %p2351_p2 }
  0x4d   : > { %p2359_p10 = pnand %p2358_p5, %p2352_p4 }
  0x4f   : > { %2362 = shalt.err (!%p2359_p10)
}
  0x50   : > { %2198 = dma.hbm_to_vmem [thread:$0]  (!%p2736_p6), %s3216_s4, 512, %s2740_s29, [#allocation9], %s2614_s14, %s2614_s14, %s2615_s15  }
  0x51   : > { %s3217_s6 = sld [smem:[#allocation27_spill]] }
  0x57   : > { %s2363_s16 = scalar_lea.hbm %s3217_s6, 512 }
  0x58   : > { %p2364_p11 = scmp.ne.s32.totalorder %s3217_s6, %s2363_s16  ;;  %p2370_p0 = scmp.lt.u32.totalorder %s2363_s16, %s3217_s6 }
  0x5a   : > { %p2366_p12 = pnand %p2364_p11, %p2752_p8 }
  0x5c   : > { %p2367_p13 = pneg %p2366_p12 }
  0x5e   : > { %p2372_p2 = pnand %p2370_p0, %p2367_p13 }
  0x60   : > { %2375 = shalt.err (!%p2372_p2)
}
  0x61   : > { %s2376_s26 = scalar_lea.vmem %s376_s12, 512  ;;  %p2384_p5 = scmp.lt.s32.totalorder %s376_s12, %s376_s12 }
  0x62   : > { %p2377_p4 = scmp.ne.s32.totalorder %s376_s12, %s2376_s26  ;;  %p2385_p10 = scmp.lt.s32.totalorder %s2376_s26, %s2376_s26 }
  0x64   : > { %p2379_p7 = pnand %p2377_p4, %p2752_p8  ;;  %p2386_p1 = por %p2385_p10, %p2384_p5 }
  0x66   : > { %p2380_p9 = pneg %p2379_p7 }
  0x68   : > { %p2387_p3 = pnand %p2386_p1, %p2380_p9 }
  0x6a   : > { %2390 = shalt.err (!%p2387_p3)
}
  0x6b   : > { %2201 = dma.hbm_to_vmem [thread:$0]  (!%p2736_p6), %s3217_s6, 512, %s376_s12, [#allocation9], %s2614_s14, %s2614_s14, %s2615_s15  }
  0x6c   : > { %s2616_s9 = smov [#allocation11]   ;;  %s3218_s8 = sld [smem:[#allocation29_spill]] }
  0x6d   : > { %s391_s11 = sshll.u32 %s2616_s9, 4  ;;  %s392_s11 = int_to_ptr.vmem [resolvable:$true] %s391_s11 }
  0x72   : > { %s2391_s25 = scalar_lea.hbm %s3218_s8, 512 }
  0x73   : > { %p2392_p1 = scmp.ne.s32.totalorder %s3218_s8, %s2391_s25  ;;  %p2398_p12 = scmp.lt.u32.totalorder %s2391_s25, %s3218_s8 }
  0x75   : > { %p2394_p3 = pnand %p2392_p1, %p2752_p8 }
  0x77   : > { %p2395_p11 = pneg %p2394_p3 }
  0x79   : > { %p2400_p13 = pnand %p2398_p12, %p2395_p11 }
  0x7b   : > { %2403 = shalt.err (!%p2400_p13)
}
  0x7c   : > { %s2404_s12 = scalar_lea.vmem %s392_s11, 512  ;;  %p2412_p7 = scmp.lt.s32.totalorder %s392_s11, %s392_s11 }
  0x7d   : > { %p2405_p0 = scmp.ne.s32.totalorder %s392_s11, %s2404_s12  ;;  %p2413_p9 = scmp.lt.s32.totalorder %s2404_s12, %s2404_s12 }
  0x7f   : > { %p2407_p2 = pnand %p2405_p0, %p2752_p8  ;;  %p2414_p5 = por %p2413_p9, %p2412_p7 }
  0x81   : > { %p2408_p4 = pneg %p2407_p2 }
  0x83   : > { %p2415_p10 = pnand %p2414_p5, %p2408_p4 }
  0x85   : > { %2418 = shalt.err (!%p2415_p10)
}
  0x86   : > { %2204 = dma.hbm_to_vmem [thread:$0]  (!%p2736_p6), %s3218_s8, 512, %s392_s11, [#allocation12], %s2614_s14, %s2614_s14, %s2615_s15  }
  0x87   : > { %s1964_s10 = sadd.s32 4294967294, %s2609_s22   ;;  %s48_s27 = sadd.s32 1, %s2605_s21 }
  0x88   : > { %p50_p8 = scmp.ge.s32.totalorder %s48_s27, 2  ;;  %s57_s9 = sadd.s32 1, %s2597_s19 }
  0x89   : > { %p64_p1 = scmp.ne.s32.totalorder %s2597_s19, %s2593_s18  ;;  %p65_p3 = scmp.eq.s32.totalorder %s2609_s22, 0 }
  0x8a   : > { %s3249_s27 = smov (%p50_p8, %s48_s27), 0  ;;  %p70_p12 = scmp.ne.s32.totalorder %s2593_s18, %s2589_s17 }
  0x8b   : > { %3219 = sst [smem:[#allocation24_spill]] %s3249_s27  ;;  %p2853_p11 = por %p65_p3, %p64_p1 }
  0x8c   : > { %s52_s14 = ssub.s32 %s2605_s21, %s3249_s27  ;;  %p290_p6 = scmp.eq.s32.totalorder %s2720_s23, 1 }
  0x8d   : > { %p55_p13 = scmp.eq.s32.totalorder %s52_s14, 0  ;;  %p3221_p0 = scmp.eq.s32.totalorder %s2720_s23, 0 }
  0x8e   : > { %p2868_p4 = por %p290_p6, %p64_p1  ;;  %p296_p7 = scmp.eq.s32.totalorder %s1964_s10, 1 }
  0x8f   : > { %p2864_p2 = por %p3221_p0, %p70_p12  ;;  %p2223_p5 = scmp.lt.s32.totalorder %s2609_s22, 2 }
  0x90   : > { %s3223_s11 = scalar_select %p2868_p4, 1, 0 }
  0x91   : > { %s3222_s15 = scalar_select %p2864_p2, 1, 0 }
  0x92   : > { %s2873_s16 = scalar_select %p55_p13, %s2597_s19, %s57_s9  }
  0x93   : > { %p2875_p9 = por %p296_p7, %p70_p12  ;;  %s408_s28 = sand.u32 1, %s2597_s19  }
  0x94   : > { %s1972_s30 = sshll.u32 %s2605_s21, 7  ;;  %s2882_s13 = sshll.u32 %s408_s28, 3 }
  0x95   : > { %s3224_s25 = scalar_select %p2875_p9, 1, 0 }
  0x96   : > { %s2887_s29 = scalar_lea.hbm %s3183_s0, %s1972_s30  ;;  %s412_s7 = scalar_lea.vmem [#allocation2], %s2882_s13 }
  0x97   : > { %s420_s10 = sshll.u32 %s412_s7, 4  ;;  %p2892_p10 = pnand %p2223_p5, %p2853_p11  ;;  %s2896_s10 = int_to_ptr.vmem [resolvable:$true] %s420_s10 }
  0x98   : > { %s2901_s12 = scalar_lea.hbm %s3184_s1, %s1972_s30  ;;  %s409_s2 = scalar_lea.sflag [#allocation3], %s408_s28 }
  0x99   : > { %s2419_s4 = scalar_lea.hbm %s2887_s29, 128  ;;  %p2421_p1 = pneg %p2892_p10 }
  0x9a   : > { %p2420_p8 = scmp.ne.s32.totalorder %s2887_s29, %s2419_s4  ;;  %s2424_s6 = scalar_lea.hbm %s3183_s0, 256 }
  0x9b   : > { %p2425_p12 = scmp.lt.u32.totalorder %s2887_s29, %s3183_s0  ;;  %p2426_p6 = scmp.lt.u32.totalorder %s2424_s6, %s2419_s4 }
  0x9c   : > { %p2422_p3 = pnand %p2421_p1, %p2420_p8  ;;  %p2428_p0 = scmp.lt.u32.totalorder %s2419_s4, %s2887_s29 }
  0x9d   : > { %p2427_p13 = por %p2426_p6, %p2425_p12 }
  0x9e   : > { %p2423_p11 = pneg %p2422_p3 }
  0x9f   : > { %p2429_p7 = por %p2428_p0, %p2427_p13 }
  0xa1   : > { %p2430_p5 = pnand %p2429_p7, %p2423_p11 }
  0xa3   : > { %2433 = shalt.err (!%p2430_p5)
}
  0xa4   : > { %s2434_s28 = scalar_lea.vmem %s2896_s10, 128  ;;  %s2617_s30 = smov [#allocation2]  }
  0xa5   : > { %p2435_p8 = scmp.ne.s32.totalorder %s2896_s10, %s2434_s28  ;;  %s2439_s14 = sshll.u32 %s2617_s30, 4  ;;  %s2440_s14 = int_to_ptr.vmem [resolvable:$false] %s2439_s14 }
  0xa6   : > { %s2441_s8 = scalar_lea.vmem %s2440_s14, 256  ;;  %p2442_p4 = scmp.lt.s32.totalorder %s2896_s10, %s2440_s14 }
  0xa7   : > { %p2437_p3 = pnand %p2435_p8, %p2421_p1  ;;  %p2443_p12 = scmp.lt.s32.totalorder %s2441_s8, %s2434_s28 }
  0xa9   : > { %p2438_p9 = pneg %p2437_p3  ;;  %p2444_p6 = por %p2443_p12, %p2442_p4 }
  0xab   : > { %p2445_p13 = pnand %p2444_p6, %p2438_p9 }
  0xad   : > { %2448 = shalt.err (!%p2445_p13)
}
  0xae   : > { %2208 = dma.hbm_to_vmem [thread:$0]  (!%p2892_p10), %s2887_s29, 128, %s2896_s10, %s409_s2  }
  0xaf   : > { %s427_s4 = sand.u32 1, %s2609_s22   ;;  %s431_s6 = scalar_lea.vmem [#allocation5], %s2882_s13 }
  0xb0   : > { %s438_s27 = sshll.u32 %s431_s6, 4  ;;  %s428_s26 = scalar_lea.sflag [#allocation6], %s427_s4  ;;  %s439_s27 = int_to_ptr.vmem [resolvable:$true] %s438_s27 }
  0xb1   : > { %s2449_s20 = scalar_lea.hbm %s2901_s12, 128  ;;  %s2454_s30 = scalar_lea.hbm %s3184_s1, 256 }
  0xb2   : > { %p2450_p4 = scmp.ne.s32.totalorder %s2901_s12, %s2449_s20  ;;  %p2455_p0 = scmp.lt.u32.totalorder %s2901_s12, %s3184_s1 }
  0xb3   : > { %p2456_p7 = scmp.lt.u32.totalorder %s2454_s30, %s2449_s20  ;;  %p2458_p8 = scmp.lt.u32.totalorder %s2449_s20, %s2901_s12 }
  0xb4   : > { %p2452_p9 = pnand %p2450_p4, %p2421_p1 }
  0xb5   : > { %p2457_p5 = por %p2456_p7, %p2455_p0 }
  0xb6   : > { %p2453_p11 = pneg %p2452_p9 }
  0xb7   : > { %p2459_p3 = por %p2458_p8, %p2457_p5 }
  0xb9   : > { %p2460_p12 = pnand %p2459_p3, %p2453_p11 }
  0xbb   : > { %2463 = shalt.err (!%p2460_p12)
}
  0xbc   : > { %s2464_s2 = scalar_lea.vmem %s439_s27, 128  ;;  %s2618_s13 = smov [#allocation5]  }
  0xbd   : > { %p2465_p6 = scmp.ne.s32.totalorder %s439_s27, %s2464_s2  ;;  %s2469_s29 = sshll.u32 %s2618_s13, 4  ;;  %s2470_s29 = int_to_ptr.vmem [resolvable:$false] %s2469_s29 }
  0xbe   : > { %s2471_s10 = scalar_lea.vmem %s2470_s29, 256  ;;  %p2472_p9 = scmp.lt.s32.totalorder %s439_s27, %s2470_s29 }
  0xbf   : > { %p2467_p13 = pnand %p2465_p6, %p2421_p1  ;;  %p2473_p2 = scmp.lt.s32.totalorder %s2471_s10, %s2464_s2 }
  0xc1   : > { %p2468_p4 = pneg %p2467_p13  ;;  %p2474_p0 = por %p2473_p2, %p2472_p9 }
  0xc3   : > { %p2475_p7 = pnand %p2474_p0, %p2468_p4 }
  0xc5   : > { %2478 = shalt.err (!%p2475_p7)
}
  0xc6   : > { %2211 = dma.hbm_to_vmem [thread:$0]  (!%p2892_p10), %s2901_s12, 128, %s439_s27, %s428_s26  }
  0xc7   : > { %p3226_p11 = scmp.ne.s32.totalorder %s3212_s24, 0 }
  0xc8   : > { %s2952_s4 = sand.u32 (!%p3226_p11), 1, %s2593_s18   ;;  %p3227_p2 = scmp.ne.s32.totalorder (!%p3226_p11), %s3222_s15, 0 }
  0xc9   : > { %447 = sbr.rel (%p3226_p11) target bundleno = 2806 (0xaf6), region = 60  ;;  %s2955_s6 = sshll.u32 (!%p3226_p11), %s2952_s4, 3 }
  0xca   : > { %s450_s20 = scalar_lea.sflag (!%p3226_p11), [#allocation3], %s2952_s4  ;;  %s453_s7 = scalar_lea.vmem (!%p3226_p11), [#allocation2], %s2955_s6 }
  0xd0   : > { %2560 = dma.done.wait (%p3227_p2), %s450_s20, 128  }
  0xd1   : > { %2562 = vsyncadd (%p3227_p2), %s450_s20, 4294967168  ;;  %s458_s24 = sand.u32 1, %s2720_s23   ;;  %s462_s12 = scalar_lea.vmem [#allocation5], %s2955_s6 }
  0xd2   : > { %s459_s9 = scalar_lea.sflag [#allocation6], %s458_s24 }
  0xd3   : > { %2564 = dma.done.wait (%p3227_p2), %s459_s9, 128  }
  0xd4   : > { %2566 = vsyncadd (%p3227_p2), %s459_s9, 4294967168  ;;  %p3228_p10 = scmp.eq.s32.totalorder %s2720_s23, 0 }
  0xd6   : > { %2568 = dma.done.wait (%p3228_p10), [#allocation6], 512   ;;  %p3229_p1 = pmov %p3228_p10 }
  0xd8   : > { %2570 = vsyncadd (%p3229_p1), [#allocation6], 4294966784  ;;  %p3230_p5 = pmov %p3229_p1 }
  0xd9   : > { %p3231_p8 = pmov %p3229_p1 }
  0xda   : > { %2572 = dma.done.wait (%p3230_p5), [#allocation9], 1024  }
  0xdb   : > { %2574 = vsyncadd (%p3231_p8), [#allocation9], 4294966272  ;;  %p3232_p3 = pmov %p3229_p1 }
  0xdc   : > { %p3233_p12 = pmov %p3229_p1 }
  0xdd   : > { %2576 = dma.done.wait (%p3232_p3), [#allocation12], 512  }
  0xde   : > { %2578 = vsyncadd (%p3233_p12), [#allocation12], 4294966784  ;;  %v2619_v0 = vmov 0.0|0.0   ;;  %vm2620_vm0 = vmmov 0   ;;  %v2621_v1 = vmov 0.0   ;;  %v615_v2 = vld [vmem:[#allocation8] sm:$0xff] }
  0xdf   : > { %2156 = vmatprep.subr.bf16.mxu1 %v2619_v0  ;;  %2150 = vmatprep.subr.bf16.mxu0 %v2619_v0  ;;  %v616_v3 = vld [vmem:[#allocation8 + $0x8] sm:$0xff]  ;;  %v529_v4 = vld [vmem:[#allocation7] sm:$0xff]  ;;  %v617_v7 = vld [vmem:[#allocation8 + $0x10] sm:$0xff]  ;;  %vm540_vm1 = vcmask 261120   ;;  %vm780_vm2 = vcmask 64512   ;;  %s2622_s28 = smov 120  }
  0xe0   : > { %2076 = vmatprep.mubr.msk.f32.mxu1 %vm2620_vm0, %v2621_v1  ;;  %2065 = vmatprep.mubr.msk.f32.mxu0 %vm2620_vm0, %v2621_v1  ;;  %v2157_v5 = vpack.c.bf16 %v616_v3, %v615_v2  ;;  %v530_v6 = vld [vmem:[#allocation7 + $0x8] sm:$0xff]  ;;  %v618_v8 = vld [vmem:[#allocation8 + $0x18] sm:$0xff]  ;;  %v531_v10 = vld [vmem:[#allocation7 + $0x10] sm:$0xff]  ;;  %s3234_s8 = sld [smem:[#allocation28_spill]]  ;;  %s2623_s2 = smov 112  }
  0xe1   : > { %v2151_v9 = vpack.c.bf16 %v530_v6, %v529_v4  ;;  %v532_v11 = vld [vmem:[#allocation7 + $0x18] sm:$0xff]  ;;  %v2160_v12 = vpack.c.bf16 %v618_v8, %v617_v7  ;;  %v527_v15 = vld [vmem:[%s453_s7] sm:$0xff]  ;;  %v701_v18 = vld [vmem:[#allocation10 + $0x10] sm:$0xff]  ;;  %s2624_s13 = smov 104   ;;  %s1983_s29 = sshll.u32 %s2952_s4, 5 }
  0xe2   : > { %2158 = vmatpush3.bf16.msra.mxu1 %v2157_v5  ;;  %v2154_v13 = vpack.c.bf16 %v532_v11, %v531_v10  ;;  %v528_v14 = vld [vmem:[%s462_s12] sm:$0xff]  ;;  %v699_v16 = vld [vmem:[#allocation10] sm:$0xff]  ;;  %v700_v17 = vld [vmem:[#allocation10 + $0x8] sm:$0xff]  ;;  %s3039_s10 = scalar_lea.vmem [#allocation14], %s1983_s29  ;;  %s3235_s20 = sld [smem:[#allocation23_spill]] }
  0xe3   : > { %2152 = vmatpush3.bf16.msra.mxu0 %v2151_v9  ;;  %2159 = vmatprep.subr.bf16.mxu1 %v2619_v0  ;;  %v2163_v19 = vpack.c.bf16 %v700_v17, %v699_v16  ;;  %v702_v20 = vld [vmem:[#allocation10 + $0x18] sm:$0xff]  ;;  %v1986_v22 = vld [vmem:[%s3188_s5] ss:$0 sm:$0xff]  ;;  %v1111_v56 = vld [vmem:[#allocation11 + $0x8] sm:$0xff]  ;;  %s1785_s24 = sshll.u32 %s3039_s10, 4  ;;  %s3236_s23 = sld [smem:[#allocation32_spill]]  ;;  %s3099_s24 = int_to_ptr.vmem [resolvable:$true] %s1785_s24 }
  0xe4   : > { %2153 = vmatprep.subr.bf16.mxu0 %v2619_v0  ;;  %v2166_v21 = vpack.c.bf16 %v702_v20, %v701_v18  ;;  %v1984_v23 = vld [vmem:[%s3186_s3] ss:$0 sm:$0xff]  ;;  %s1757_s27 = scalar_lea.sflag [#allocation15], %s2952_s4  ;;  %s2479_s26 = scalar_lea.vmem %s3099_s24, 512 }
  0xe5   : > { %v942_v61 = vld [vmem:[#allocation11] sm:$0xff]  ;;  %p2480_p6 = scmp.ne.s32.totalorder %s3099_s24, %s2479_s26  ;;  %p3237_p13 = scmp.ne.s32.totalorder %s3223_s11, 0 }
  0xe6   : > { %2161 = vmatpush3.bf16.msra.mxu1 %v2160_v12  ;;  %v1988_v31 = vld [vmem:[%s3234_s8] ss:$0 sm:$0xff] }
  0xe7   : > { %2155 = vmatpush3.bf16.msra.mxu0 %v2154_v13  ;;  %2090 = vmatprep.subr.mxu1 %v2621_v1  ;;  %p2481_p4 = pnand %p2480_p6, %p3237_p13 }
  0xe8   : > { %2162 = vmatprep.subr.bf16.mxu0 %v2619_v0  ;;  %s2017_s7 = sshll.u32 %s3235_s20, 9 }
  0xe9   : > { %2077 = vmatmul.mubr.msk.f32.vlgmr.msra.gmra.mrb[0].mxu1 %vm540_vm1, %v528_v14  ;;  %s3097_s15 = scalar_lea.hbm %s3236_s23, %s2017_s7  ;;  %p2482_p9 = pneg %p2481_p4 }
  0xea   : > { %2066 = vmatmul.mubr.msk.f32.vlgmr.msra.gmra.mrb[0].mxu0 %vm540_vm1, %v527_v15  ;;  %2092 = vmatprep.mubr.msk.f32.mxu1 %vm2620_vm0, %v2621_v1 }
  0xeb   : > { %2087 = vmatprep.mubr.msk.f32.mxu0 %vm2620_vm0, %v2621_v1  ;;  %2164 = vmatpush3.bf16.msra.mxu0 %v2163_v19 }
  0xec   : > { %2165 = vmatprep.subr.bf16.mxu0 %v2619_v0 }
  0xef   : > { %2167 = vmatpush3.bf16.msra.mxu0 %v2166_v21 }
  0xf0   : > { %2100 = vmatprep.subr.mxu0 %v2621_v1 }
  0xf2   : > { %2088 = vmatmul.mubr.msk.f32.vlgmr.msra.gmra.mrb[2].mxu0 %vm540_vm1, %v528_v14 }
  0xf3   : > { %2102 = vmatprep.mubr.msk.f32.mxu0 %vm2620_vm0, %v2621_v1 }
 0x1bc   : > { %v695_v24 = vpop.f32.mrb[0].mxu1 }
 0x1bd   : > { %v696_v25 = vadd.f32 %v1986_v22, %v695_v24  ;;  %v610_v26 = vpop.f32.mrb[0].mxu0  ;;  %v2078_v27 = vpop.f32.mrb[1].mxu1  ;;  %v1425_v24 = vld [vmem:[#allocation11 + $0x10] sm:$0xff] }
 0x1be   : > { %v611_v28 = vadd.f32 %v1984_v23, %v610_v26  ;;  %v2067_v29 = vpop.f32.mrb[1].mxu0 }
 0x1bf   : > { %945 = vrot.lane.b32.xlu0 %v696_v25, %s2622_s28  ;;  %2091 = vmatpush3.xpose.msk.msra.mxu1 %vm780_vm2, %v696_v25 }
 0x1c0   : > { %v3008_v30 = vmul.f32 0.35355338, %v611_v28  ;;  %2095 = vmatprep.subr.mxu1 %v2621_v1 }
 0x1c2   : > { %2093 = vmatmul.mubr.msk.f32.vlgmr.msra.gmra.mrb[2].mxu1 %vm780_vm2, %v3008_v30 }
 0x1c3   : > { %943 = vrot.lane.b32.xlu0 %v3008_v30, %s2622_s28  ;;  %2097 = vmatprep.mubr.msk.f32.mxu1 %vm2620_vm0, %v2621_v1 }
 0x1c5   : > { %v776_v32 = vpop.f32.mrb[2].mxu0 }
 0x1c6   : > { %v3020_v33 = vadd.f32 %v1988_v31, %v776_v32  ;;  %v2089_v34 = vpop.f32.mrb[3].mxu0 }
 0x1c8   : > { %2096 = vmatpush3.msra.mxu1 %v3020_v33 }
 0x1c9   : > { %2105 = vmatprep.subr.mxu1 %v2621_v1 }
 0x231   : > { %v946_v35 = vpop.permute.xlu0 %945 }
 0x232   : > { %2101 = vmatpush3.xpose.msk.msra.mxu0 %vm780_vm2, %v946_v35 }
 0x233   : > { %2110 = vmatprep.subr.mxu0 %v2621_v1 }
 0x235   : > { %v944_v36 = vpop.permute.xlu0 %943 }
 0x236   : > { %2103 = vmatmul.mubr.msk.f32.vlgmr.msra.gmra.mrb[4].mxu0 %vm780_vm2, %v944_v36  ;;  %v1667_v36 = vld [vmem:[#allocation11 + $0x18] sm:$0xff] }
 0x237   : > { %2112 = vmatprep.mubr.msk.f32.mxu0 %vm2620_vm0, %v2621_v1  ;;  %2111 = vmatpush3.msra.mxu0 %v1111_v56 }
 0x238   : > { %2120 = vmatprep.subr.mxu0 %v2621_v1 }
 0x295   : > { %v853_v37 = vpop.f32.mrb[2].mxu1 }
 0x296   : > { %v2094_v38 = vpop.f32.mrb[3].mxu1  ;;  %v857_v39 = vsel %vm780_vm2, %v853_v37, -inf }
 0x297   : > { %858 = vmax.xlane.f32.xlu1 %v857_v39 }
 0x309   : > { %v1017_v40 = vpop.f32.mrb[4].mxu0 }
 0x30a   : > { %v2104_v41 = vpop.f32.mrb[5].mxu0  ;;  %v1021_v42 = vsel %vm780_vm2, %v1017_v40, -inf }
 0x30b   : > { %1022 = vmax.xlane.f32.xlu1 %v1021_v42 }
 0x324   : > { %v859_v43 = vpop.xlane.xlu1 %858 }
 0x325   : > { %v860_v44 = vsub.f32 %v853_v37, %v859_v43 }
 0x327   : > { %v861_v45 = vmul.f32 1.442695, %v860_v44 }
 0x329   : > { %2291 = vpow2.f32 %v861_v45 }
 0x333   : > { %v2292_v46 = vpop.eup %2291 }
 0x334   : > { %v863_v47 = vsel %vm780_vm2, %v2292_v46, 0.0 }
 0x335   : > { %864 = vadd.xlane.f32.xlu0 %v863_v47 }
 0x34b   : > { %1349 = vrot.lane.b32.xlu0 %v3020_v33, %s2623_s2 }
 0x34f   : > { %1502 = vrot.lane.b32.xlu0 %v696_v25, %s2624_s13 }
 0x398   : > { %v1023_v48 = vpop.xlane.xlu1 %1022 }
 0x399   : > { %v1024_v49 = vsub.f32 %v1017_v40, %v1023_v48 }
 0x39b   : > { %v1025_v50 = vmul.f32 1.442695, %v1024_v49 }
 0x39d   : > { %2293 = vpow2.f32 %v1025_v50 }
 0x3a7   : > { %v2294_v51 = vpop.eup %2293 }
 0x3a8   : > { %v1027_v52 = vsel %vm780_vm2, %v2294_v51, 0.0 }
 0x3a9   : > { %1028 = vadd.xlane.f32.xlu1 %v1027_v52 }
 0x3ba   : > { %1035 = vrot.lane.b32.xlu1 %v3020_v33, %s2622_s28  ;;  %s2625_s28 = smov [#allocation14]  }
 0x3bb   : > { %s2483_s30 = sshll.u32 %s2625_s28, 4  ;;  %s2484_s30 = int_to_ptr.vmem [resolvable:$false] %s2483_s30 }
 0x3bc   : > { %s2485_s14 = scalar_lea.vmem %s2484_s30, 1024  ;;  %p2486_p0 = scmp.lt.s32.totalorder %s3099_s24, %s2484_s30 }
 0x3bd   : > { %p2487_p7 = scmp.lt.s32.totalorder %s2485_s14, %s2479_s26 }
 0x3be   : > { %1260 = vrot.lane.b32.xlu1 %v696_v25, %s2623_s2 }
 0x3bf   : > { %p2488_p11 = por %p2487_p7, %p2486_p0 }
 0x3c1   : > { %p2489_p2 = pnand %p2488_p11, %p2482_p9 }
 0x3c2   : > { %v865_v53 = vpop.xlane.xlu0 %864  ;;  %1258 = vrot.lane.b32.xlu1 %v3008_v30, %s2623_s2 }
 0x3c3   : > { %2295 = vrcp.f32 %v865_v53 }
 0x3c6   : > { %v1350_v63 = vpop.permute.xlu0 %1349 }
 0x3ca   : > { %v1503_v19 = vpop.permute.xlu0 %1502 }
 0x3cd   : > { %v2296_v54 = vpop.eup %2295 }
 0x3ce   : > { %v867_v55 = vmul.f32 %v2296_v54, %v2292_v46 }
 0x3d0   : > { %868 = vst.msk [vmem:[%s3039_s10] sm:$0xff] %vm780_vm2, %v867_v55  ;;  %2098 = vmatmul.mubr.msk.f32.vlgmr.msra.gmra.mrb[4].mxu1 %vm780_vm2, %v867_v55 }
 0x3d1   : > { %2107 = vmatprep.mubr.msk.f32.mxu1 %vm2620_vm0, %v2621_v1 }
 0x436   : > { %v1029_v57 = vpop.xlane.xlu1 %1028 }
 0x437   : > { %2297 = vrcp.f32 %v1029_v57 }
 0x43a   : > { %v1036_v58 = vpop.permute.xlu1 %1035 }
 0x43b   : > { %2106 = vmatpush3.msra.mxu1 %v1036_v58 }
 0x43c   : > { %2115 = vmatprep.subr.mxu1 %v2621_v1 }
 0x43e   : > { %v1261_v2 = vpop.permute.xlu1 %1260 }
 0x441   : > { %v2298_v59 = vpop.eup %2297 }
 0x442   : > { %v1031_v60 = vmul.f32 %v2298_v59, %v2294_v51  ;;  %v1259_v5 = vpop.permute.xlu1 %1258 }
 0x444   : > { %1995 = vst.msk [vmem:[%s3039_s10 + $0x8] sm:$0xff] %vm780_vm2, %v1031_v60  ;;  %2108 = vmatmul.mubr.msk.f32.vlgmr.msra.gmra.mrb[6].mxu1 %vm780_vm2, %v1031_v60 }
 0x445   : > { %2116 = vmatpush3.msra.mxu1 %v942_v61  ;;  %2117 = vmatprep.mubr.msk.f32.mxu1 %vm2620_vm0, %v2621_v1 }
 0x446   : > { %2125 = vmatprep.subr.mxu1 %v2621_v1 }
 0x4a3   : > { %v938_v62 = vpop.f32.mrb[4].mxu1 }
 0x4a4   : > { %v2099_v0 = vpop.f32.mrb[5].mxu1  ;;  %2118 = vmatmul.mubr.msk.f32.vlgmr.msra.gmra.mrb[8].mxu1 %vm780_vm2, %v938_v62 }
 0x4a5   : > { %2126 = vmatpush3.msra.mxu1 %v1350_v63  ;;  %2127 = vmatprep.mubr.msk.f32.mxu1 %vm2620_vm0, %v2621_v1 }
 0x4a6   : > { %2135 = vmatprep.subr.mxu1 %v2621_v1 }
 0x517   : > { %v1107_v3 = vpop.f32.mrb[6].mxu1 }
 0x518   : > { %v2109_v4 = vpop.f32.mrb[7].mxu1  ;;  %2113 = vmatmul.mubr.msk.f32.vlgmr.msra.gmra.mrb[6].mxu0 %vm780_vm2, %v1107_v3 }
 0x519   : > { %2121 = vmatpush3.xpose.msk.msra.mxu0 %vm780_vm2, %v1261_v2  ;;  %2122 = vmatprep.mubr.msk.f32.mxu0 %vm2620_vm0, %v2621_v1 }
 0x51a   : > { %2130 = vmatprep.subr.mxu0 %v2621_v1 }
 0x51c   : > { %2123 = vmatmul.mubr.msk.f32.vlgmr.msra.gmra.mrb[8].mxu0 %vm780_vm2, %v1259_v5 }
 0x51d   : > { %2132 = vmatprep.mubr.msk.f32.mxu0 %vm2620_vm0, %v2621_v1  ;;  %2131 = vmatpush3.msra.mxu0 %v1425_v24 }
 0x51e   : > { %2140 = vmatprep.subr.mxu0 %v2621_v1 }
 0x577   : > { %v1254_v6 = vpop.f32.mrb[8].mxu1 }
 0x578   : > { %v2119_v7 = vpop.f32.mrb[9].mxu1 }
 0x5eb   : > { %v1181_v8 = vpop.f32.mrb[6].mxu0 }
 0x5ec   : > { %v1255_v9 = vadd.f32 %v1254_v6, %v1181_v8  ;;  %v2114_v10 = vpop.f32.mrb[7].mxu0 }
 0x5ef   : > { %v1332_v11 = vpop.f32.mrb[8].mxu0 }
 0x5f0   : > { %v2124_v12 = vpop.f32.mrb[9].mxu0  ;;  %v1336_v13 = vsel %vm780_vm2, %v1332_v11, -inf }
 0x5f1   : > { %1337 = vmax.xlane.f32.xlu1 %v1336_v13 }
 0x67e   : > { %v1338_v14 = vpop.xlane.xlu1 %1337 }
 0x67f   : > { %v1339_v15 = vsub.f32 %v1332_v11, %v1338_v14 }
 0x681   : > { %v1340_v16 = vmul.f32 1.442695, %v1339_v15 }
 0x683   : > { %2299 = vpow2.f32 %v1340_v16 }
 0x68d   : > { %v2300_v17 = vpop.eup %2299 }
 0x68e   : > { %v1342_v18 = vsel %vm780_vm2, %v2300_v17, 0.0 }
 0x68f   : > { %1343 = vadd.xlane.f32.xlu0 %v1342_v18 }
 0x6a5   : > { %1500 = vrot.lane.b32.xlu0 %v3008_v30, %s2624_s13 }
 0x71c   : > { %v1344_v20 = vpop.xlane.xlu0 %1343 }
 0x71d   : > { %2301 = vrcp.f32 %v1344_v20 }
 0x720   : > { %v1501_v23 = vpop.permute.xlu0 %1500 }
 0x727   : > { %v2302_v21 = vpop.eup %2301 }
 0x728   : > { %v1346_v22 = vmul.f32 %v2302_v21, %v2300_v17 }
 0x72a   : > { %2001 = vst.msk [vmem:[%s3039_s10 + $0x10] sm:$0xff] %vm780_vm2, %v1346_v22  ;;  %2128 = vmatmul.mubr.msk.f32.vlgmr.msra.gmra.mrb[10].mxu1 %vm780_vm2, %v1346_v22 }
 0x72b   : > { %2136 = vmatpush3.xpose.msk.msra.mxu1 %vm780_vm2, %v1503_v19  ;;  %2137 = vmatprep.mubr.msk.f32.mxu1 %vm2620_vm0, %v2621_v1 }
 0x72c   : > { %2145 = vmatprep.subr.mxu1 %v2621_v1 }
 0x72e   : > { %2138 = vmatmul.mubr.msk.f32.vlgmr.msra.gmra.mrb[12].mxu1 %vm780_vm2, %v1501_v23 }
 0x72f   : > { %2147 = vmatprep.mubr.msk.f32.mxu1 %vm2620_vm0, %v2621_v1  ;;  %2146 = vmatpush3.msra.mxu1 %v1667_v36 }
 0x7fd   : > { %v1421_v25 = vpop.f32.mrb[10].mxu1 }
 0x7fe   : > { %v2129_v26 = vpop.f32.mrb[11].mxu1  ;;  %2133 = vmatmul.mubr.msk.f32.vlgmr.msra.gmra.mrb[10].mxu0 %vm780_vm2, %v1421_v25 }
 0x7ff   : > { %2142 = vmatprep.mubr.msk.f32.mxu0 %vm2620_vm0, %v2621_v1 }
 0x801   : > { %v1574_v27 = vpop.f32.mrb[12].mxu1 }
 0x802   : > { %v2139_v28 = vpop.f32.mrb[13].mxu1  ;;  %v1578_v29 = vsel %vm780_vm2, %v1574_v27, -inf }
 0x803   : > { %1579 = vmax.xlane.f32.xlu0 %v1578_v29 }
 0x890   : > { %v1580_v30 = vpop.xlane.xlu0 %1579 }
 0x891   : > { %v1581_v31 = vsub.f32 %v1574_v27, %v1580_v30 }
 0x893   : > { %v1582_v32 = vmul.f32 1.442695, %v1581_v31 }
 0x895   : > { %2303 = vpow2.f32 %v1582_v32 }
 0x89f   : > { %v2304_v34 = vpop.eup %2303 }
 0x8a0   : > { %v1584_v35 = vsel %vm780_vm2, %v2304_v34, 0.0 }
 0x8a1   : > { %1585 = vadd.xlane.f32.xlu1 %v1584_v35 }
 0x8b2   : > { %1591 = vrot.lane.b32.xlu1 %v3020_v33, %s2624_s13 }
 0x8d1   : > { %v1495_v1 = vpop.f32.mrb[10].mxu0 }
 0x8d2   : > { %v1499_v37 = vadd.f32 %v1495_v1, %v1255_v9  ;;  %v2134_v38 = vpop.f32.mrb[11].mxu0 }
 0x92e   : > { %v1586_v39 = vpop.xlane.xlu1 %1585 }
 0x92f   : > { %2305 = vrcp.f32 %v1586_v39 }
 0x932   : > { %v1592_v40 = vpop.permute.xlu1 %1591 }
 0x933   : > { %2141 = vmatpush3.msra.mxu0 %v1592_v40 }
 0x939   : > { %v2306_v41 = vpop.eup %2305 }
 0x93a   : > { %v1588_v42 = vmul.f32 %v2306_v41, %v2304_v34 }
 0x93c   : > { %2006 = vst.msk [vmem:[%s3039_s10 + $0x18] sm:$0xff] %vm780_vm2, %v1588_v42  ;;  %2143 = vmatmul.mubr.msk.f32.vlgmr.msra.gmra.mrb[12].mxu0 %vm780_vm2, %v1588_v42 }
 0xa0f   : > { %v1663_v33 = vpop.f32.mrb[12].mxu0 }
 0xa10   : > { %v2144_v43 = vpop.f32.mrb[13].mxu0  ;;  %2148 = vmatmul.mubr.msk.f32.vlgmr.msra.gmra.mrb[14].mxu1 %vm780_vm2, %v1663_v33 }
 0xa11   : > { %2492 = shalt.err (!%p2489_p2)
}
 0xa12   : > { %s2493_s8 = scalar_lea.hbm %s3097_s15, 512  ;;  %s2497_s29 = scalar_lea.hbm %s3236_s23, 1024 }
 0xa13   : > { %p2494_p10 = scmp.ne.s32.totalorder %s3097_s15, %s2493_s8  ;;  %p2498_p8 = scmp.lt.u32.totalorder %s3097_s15, %s3236_s23 }
 0xa14   : > { %p2499_p3 = scmp.lt.u32.totalorder %s2497_s29, %s2493_s8  ;;  %p2501_p6 = scmp.lt.u32.totalorder %s2493_s8, %s3097_s15 }
 0xa15   : > { %p2495_p1 = pnand %p2494_p10, %p3237_p13 }
 0xa16   : > { %p2500_p12 = por %p2499_p3, %p2498_p8 }
 0xa17   : > { %p2496_p5 = pneg %p2495_p1 }
 0xa18   : > { %p2502_p4 = por %p2501_p6, %p2500_p12 }
 0xa1a   : > { %p2503_p9 = pnand %p2502_p4, %p2496_p5 }
 0xa1c   : > { %2506 = shalt.err (!%p2503_p9)
}
 0xa1d   : > { %s2626_s9 = smov 128   ;;  %s2627_s12 = smov 8  }
 0xa1e   : > { %2189 = dma.vmem_to_hbm [thread:$0]  (%p3237_p13), %s3099_s24, 512, %s3097_s15, %s1757_s27, %s2626_s9, %s2626_s9, %s2627_s12  }
 0xa1f   : > { %s3238_s30 = sld [smem:[#allocation30_spill]]  ;;  %s2012_s14 = sshll.u32 %s3235_s20, 7 }
 0xa20   : > { %s519_s8 = scalar_lea.vmem [#allocation13], %s2955_s6  ;;  %s3239_s10 = sld [smem:[#allocation31_spill]] }
 0xa21   : > { %s1771_s2 = sshll.u32 %s519_s8, 4  ;;  %s1752_s24 = scalar_lea.sflag [#allocation4], %s2952_s4  ;;  %s3135_s2 = int_to_ptr.vmem [resolvable:$true] %s1771_s2 }
 0xa22   : > { %s2507_s15 = scalar_lea.vmem %s3135_s2, 128  ;;  %s2628_s6 = smov [#allocation13]  }
 0xa23   : > { %p2508_p0 = scmp.ne.s32.totalorder %s3135_s2, %s2507_s15  ;;  %s2511_s20 = sshll.u32 %s2628_s6, 4  ;;  %s2512_s20 = int_to_ptr.vmem [resolvable:$false] %s2511_s20 }
 0xa24   : > { %s2513_s27 = scalar_lea.vmem %s2512_s20, 256  ;;  %p2514_p2 = scmp.lt.s32.totalorder %s3135_s2, %s2512_s20 }
 0xa25   : > { %v2009_v45 = vld [vmem:[%s3238_s30] ss:$0 sm:$0xff]  ;;  %p2509_p7 = pnand %p2508_p0, %p3237_p13  ;;  %p2515_p10 = scmp.lt.s32.totalorder %s2513_s27, %s2507_s15 }
 0xa26   : > { %s3133_s7 = scalar_lea.hbm %s3239_s10, %s2012_s14 }
 0xa27   : > { %p2510_p11 = pneg %p2509_p7  ;;  %p2516_p1 = por %p2515_p10, %p2514_p2 }
 0xa29   : > { %p2517_p5 = pnand %p2516_p1, %p2510_p11 }
 0xae3   : > { %v1737_v44 = vpop.f32.mrb[14].mxu1 }
 0xae4   : > { %v1741_v46 = vadd.f32 %v1737_v44, %v1499_v37  ;;  %v2149_v47 = vpop.f32.mrb[15].mxu1 }
 0xae6   : > { %v1749_v48 = vadd.f32 %v2009_v45, %v1741_v46 }
 0xae8   : > { %1750 = vst.msk [vmem:[%s519_s8] sm:$0xff] %vm540_vm1, %v1749_v48 }
 0xae9   : > { %2520 = shalt.err (!%p2517_p5)
}
 0xaea   : > { %s2521_s4 = scalar_lea.hbm %s3133_s7, 128  ;;  %s2525_s26 = scalar_lea.hbm %s3239_s10, 256 }
 0xaeb   : > { %p2522_p8 = scmp.ne.s32.totalorder %s3133_s7, %s2521_s4  ;;  %p2526_p6 = scmp.lt.u32.totalorder %s3133_s7, %s3239_s10 }
 0xaec   : > { %p2527_p4 = scmp.lt.u32.totalorder %s2525_s26, %s2521_s4  ;;  %p2529_p0 = scmp.lt.u32.totalorder %s2521_s4, %s3133_s7 }
 0xaed   : > { %p2523_p3 = pnand %p2522_p8, %p3237_p13 }
 0xaee   : > { %p2528_p9 = por %p2527_p4, %p2526_p6 }
 0xaef   : > { %p2524_p12 = pneg %p2523_p3 }
 0xaf0   : > { %p2530_p7 = por %p2529_p0, %p2528_p9 }
 0xaf2   : > { %p2531_p11 = pnand %p2530_p7, %p2524_p12 }
 0xaf4   : > { %2534 = shalt.err (!%p2531_p11)
}
 0xaf5   : > { %2188 = dma.vmem_to_hbm [thread:$0]  (%p3237_p13), %s3135_s2, 128, %s3133_s7, %s1752_s24  }
 0xaf6 PF: > { %s1800_s14 = sand.u32 1, %s2589_s17   ;;  %p3240_p2 = scmp.ne.s32.totalorder %s3224_s25, 0 }
 0xaf7   : > { %p3241_p10 = scmp.ge.s32.totalorder %s2609_s22, 2  ;;  %s1801_s8 = scalar_lea.sflag [#allocation4], %s1800_s14 }
 0xaf9   : > { %p2213_p1 = pnand %p3241_p10, %p3240_p2 }
 0xafb   : > { %2580 = dma.done.wait (!%p2213_p1), %s1801_s8, 128  }
 0xafc   : > { %2582 = vsyncadd (!%p2213_p1), %s1801_s8, 4294967168  ;;  %s1810_s13 = scalar_lea.sflag [#allocation15], %s1800_s14 }
 0xafd   : > { %2584 = dma.done.wait (!%p2213_p1), %s1810_s13, 512  }
 0xafe   : > { %2586 = vsyncadd (!%p2213_p1), %s1810_s13, 4294966784  ;;  %s36_s22 = sadd.s32 1, %s2609_s22   ;;  %s3242_s11 = sld [smem:[#allocation24_spill]] }
 0xaff   : > { %p33_p5 = scmp.ge.s32.totalorder %s36_s22, 4   ;;  %s3243_s17 = smov %s2593_s18 }
 0xb00   : > { %s3244_s18 = smov %s2597_s19  ;;  %s3245_s19 = smov %s2873_s16 }
 0xb01   : > { %s3246_s20 = smov %s2605_s21  ;;  %35 = sbr.rel (!%p33_p5) target bundleno = 21 (0x15), region = 154 }
 0xb04   : > { %s3247_s21 = smov %s3242_s11 }
 0xb08   :  { %1815 = vsyncpa [#allocation3], 1 }
 0xb09   :  { %1817 = vsyncpa [#allocation3 + $0x1], 1 }
 0xb0a   :  { %1818 = vsyncpa [#allocation6], 1 }
 0xb0b   :  { %1820 = vsyncpa [#allocation6 + $0x1], 1 }
 0xb0c   :  { %1821 = vsyncpa [#allocation9], 1 }
 0xb0d   :  { %1822 = vsyncpa [#allocation12], 1 }
 0xb0e   :  { %1823 = vsyncpa [#allocation4], 1 }
 0xb0f   :  { %1825 = vsyncpa [#allocation4 + $0x1], 1 }
 0xb10   :  { %1826 = vsyncpa [#allocation15], 1 }
 0xb11   :  { %1828 = vsyncpa [#allocation15 + $0x1], 1 }

</bundles_post_ra>
